<compile_context>
chip_gen: v6e
topology: v6e:2x2x1
jax: 0.10.0
libtpu: 0.0.40
codegen_flags: <defaults>
</compile_context>

<pallas_src>
import functools

import jax
import jax.numpy as jnp
from jax.experimental import pallas as pl
from jax.experimental.pallas import tpu as pltpu

_LANES = 128


def _norm_kernel(x_ref, alpha_ref, bias_ref, o_ref, *, eps, d_actual):
    """One block of rows.

    x_ref:               (block_rows, d_pad)
    alpha_ref, bias_ref: (1, d_pad)   (zero-padded beyond d_actual)

    Padded lanes (>= d_actual) are masked out of the reductions; their output
    values are sliced off by the wrapper.  Rows are fully independent, so
    garbage in a ragged last row-block cannot corrupt valid rows (their writes
    are masked by Pallas).
    """
    x = x_ref[...].astype(jnp.float32)
    d_pad = x.shape[-1]
    padded = d_pad != d_actual
    if padded:
        lane = jax.lax.broadcasted_iota(jnp.int32, x.shape, dimension=1)
        valid = lane < d_actual
        x = jnp.where(valid, x, 0.0)

    # Two back-to-back XLU reductions; mean divides by the *real* feature dim.
    mean = jnp.sum(x, axis=-1, keepdims=True) * jnp.float32(1.0 / d_actual)
    xc = x - mean
    xc_for_var = jnp.where(valid, xc, 0.0) if padded else xc
    # PyTorch x.std(dim=-1) is the unbiased estimator (divides by N-1); eps is
    # added to the std (NOT the variance) -- keep these numerics exactly.
    var = jnp.sum(xc_for_var * xc_for_var, axis=-1, keepdims=True) * jnp.float32(
        1.0 / (d_actual - 1))
    std = jnp.sqrt(var)

    # One reciprocal per row + broadcast multiply instead of a (rows, D)
    # divide.  approx=False keeps exact numerics (approx=True would be a hair
    # faster on the EUP but perturbs the result).
    inv_std = pl.reciprocal(std + jnp.float32(eps), approx=False)

    alpha = alpha_ref[...].astype(jnp.float32)
    bias = bias_ref[...].astype(jnp.float32)
    out = xc * inv_std * alpha + bias
    o_ref[...] = out.astype(o_ref.dtype)


def norm_forward(x, alpha, bias, eps=1e-6, block_rows=None,
                 pipeline_vmem_budget_bytes=16 * 1024 * 1024):
    """Pallas TPU forward for the PyTorch `Norm` module.

    x: (..., d_model); alpha, bias: (d_model,).
    """
    orig_shape = x.shape
    d_model = orig_shape[-1]
    if d_model < 2:
        # Unbiased std divides by d_model - 1.
        raise ValueError("Norm requires d_model >= 2.")

    x2 = x.reshape(-1, d_model)
    n_rows = x2.shape[0]

    # Lane-dense feature dim: pad d_model up to a multiple of 128 lanes so the
    # output stores are unmasked.  Typical d_model (1024/4096/...) is already
    # a multiple of 128, so this extra HBM pass only triggers for small/odd
    # feature dims (like the test's d_model=32).
    d_pad = pl.cdiv(d_model, _LANES) * _LANES
    if d_pad != d_model:
        x2 = jnp.pad(x2, ((0, 0), (0, d_pad - d_model)))
        alpha_p = jnp.pad(alpha, (0, d_pad - d_model))
        bias_p = jnp.pad(bias, (0, d_pad - d_model))
    else:
        alpha_p, bias_p = alpha, bias
    alpha2 = alpha_p.reshape(1, d_pad)
    bias2 = bias_p.reshape(1, d_pad)

    itemsize = jnp.dtype(x2.dtype).itemsize
    sub = 8 if itemsize >= 4 else (16 if itemsize == 2 else 32)

    if block_rows is None:
        # The auto-pipeline double-buffers input and output (~4 row-blocks of
        # VMEM).  Keep that under the budget; cap at 1024 rows per block.
        bytes_per_row = d_pad * itemsize
        max_rows = max(sub, pipeline_vmem_budget_bytes // (4 * bytes_per_row))
        block_rows = min(1024, max_rows)
    block_rows = max(sub, (block_rows // sub) * sub)
    # Never use a block taller than the (sublane-rounded) row count.
    block_rows = min(block_rows, pl.cdiv(n_rows, sub) * sub)

    # No row padding: ceil-divided grid; the ragged last block reads garbage
    # rows whose writes are masked.  Rows are independent, so this is safe —
    # do NOT introduce cross-row reductions in the kernel without revisiting.
    grid = (pl.cdiv(n_rows, block_rows),)

    kernel = functools.partial(_norm_kernel, eps=eps, d_actual=d_model)
    out = pl.pallas_call(
        kernel,
        out_shape=jax.ShapeDtypeStruct((n_rows, d_pad), x.dtype),
        grid_spec=pltpu.PrefetchScalarGridSpec(
            num_scalar_prefetch=0,
            grid=grid,
            in_specs=[
                pl.BlockSpec((block_rows, d_pad), lambda i: (i, 0)),
                pl.BlockSpec((1, d_pad), lambda i: (0, 0)),
                pl.BlockSpec((1, d_pad), lambda i: (0, 0)),
            ],
            out_specs=pl.BlockSpec((block_rows, d_pad), lambda i: (i, 0)),
        ),
        compiler_params=pltpu.CompilerParams(
            dimension_semantics=("parallel",),
            # Raise the scoped VMEM limit (defaults: 16 MiB v5e / 32 MiB
            # v6e & v7x) so the large row blocks pipeline; 48 MiB still leaves
            # headroom under v7x's 64 MiB physical VMEM per TensorCore.
            vmem_limit_bytes=48 * 1024 * 1024,
        ),
    )(x2, alpha2, bias2)

    if d_pad != d_model:
        out = out[:, :d_model]
    return out.reshape(orig_shape)


if __name__ == "__main__":
    key = jax.random.PRNGKey(0)
    batch, seq, d_model = 2, 8, 32
    eps = 1e-6

    x = jax.random.normal(key, (batch, seq, d_model), dtype=jnp.float32)

    # Deterministic parameter init, matching nn.Parameter(torch.ones/zeros).
    alpha = jnp.ones((d_model,), dtype=jnp.float32)
    bias = jnp.zeros((d_model,), dtype=jnp.float32)

    out = norm_forward(x, alpha, bias, eps=eps)
    out = jax.block_until_ready(out)

    # Pure-JAX reference (ddof=1 std, eps added to std) for a sanity check.
    mean = jnp.mean(x, axis=-1, keepdims=True)
    std = jnp.std(x, axis=-1, keepdims=True, ddof=1)
    ref = alpha * (x - mean) / (std + eps) + bias
    assert jnp.allclose(out, ref, atol=1e-5, rtol=1e-5), (
        float(jnp.max(jnp.abs(out - ref))))

    print("KERNEL_OK")
</pallas_src>

<mosaic_0001>
module attributes {stable_mosaic.version = 11 : i64} {
  func.func @_norm_kernel(%arg0: i32, %arg1: memref<16x128xf32, #tpu.memory_space<vmem>>, %arg2: memref<1x128xf32, #tpu.memory_space<vmem>>, %arg3: memref<1x128xf32, #tpu.memory_space<vmem>>, %arg4: memref<16x128xf32, #tpu.memory_space<vmem>>) attributes {dimension_semantics = [#tpu.dimension_semantics<parallel>], iteration_bounds = array<i64: 1>, scalar_prefetch = 0 : i64, scratch_operands = 0 : i64, tpu.core_type = #tpu.core_type<tc>, window_params = [{transform_indices = @transform_0, window_bounds = array<i64: 16, 128>}, {pipeline_mode = #tpu.pipeline_mode<synchronous>, transform_indices = @transform_1, window_bounds = array<i64: 1, 128>}, {pipeline_mode = #tpu.pipeline_mode<synchronous>, transform_indices = @transform_2, window_bounds = array<i64: 1, 128>}, {transform_indices = @transform_3, window_bounds = array<i64: 16, 128>}]} {
    %c0 = arith.constant 0 : index
    %c0_0 = arith.constant 0 : index
    %0 = vector.load %arg1[%c0, %c0_0] : memref<16x128xf32, #tpu.memory_space<vmem>>, vector<16x128xf32>
    %1 = tpu.iota {dimensions = array<i32: 1>} : vector<16x128xi32>
    %c32_i32 = arith.constant 32 : i32
    %2 = vector.broadcast %c32_i32 : i32 to vector<16x128xi32>
    %3 = arith.cmpi slt, %1, %2 : vector<16x128xi32>
    %cst = arith.constant 0.000000e+00 : f32
    %4 = vector.broadcast %cst : f32 to vector<16x128xf32>
    %5 = arith.select %3, %0, %4 : vector<16x128xi1>, vector<16x128xf32>
    %cst_1 = arith.constant dense<0.000000e+00> : vector<16xf32>
    %6 = vector.multi_reduction <add>, %5, %cst_1 [1] : vector<16x128xf32> to vector<16xf32>
    %7 = vector.shape_cast %6 : vector<16xf32> to vector<16x1xf32>
    %cst_2 = arith.constant 3.125000e-02 : f32
    %8 = vector.broadcast %cst_2 : f32 to vector<16x1xf32>
    %9 = arith.mulf %7, %8 : vector<16x1xf32>
    %10 = vector.broadcast %9 : vector<16x1xf32> to vector<16x128xf32>
    %11 = arith.subf %5, %10 : vector<16x128xf32>
    %cst_3 = arith.constant 0.000000e+00 : f32
    %12 = vector.broadcast %cst_3 : f32 to vector<16x128xf32>
    %13 = arith.select %3, %11, %12 : vector<16x128xi1>, vector<16x128xf32>
    %14 = arith.mulf %13, %13 : vector<16x128xf32>
    %cst_4 = arith.constant dense<0.000000e+00> : vector<16xf32>
    %15 = vector.multi_reduction <add>, %14, %cst_4 [1] : vector<16x128xf32> to vector<16xf32>
    %16 = vector.shape_cast %15 : vector<16xf32> to vector<16x1xf32>
    %cst_5 = arith.constant 0.0322580636 : f32
    %17 = vector.broadcast %cst_5 : f32 to vector<16x1xf32>
    %18 = arith.mulf %16, %17 : vector<16x1xf32>
    %19 = math.sqrt %18 : vector<16x1xf32>
    %cst_6 = arith.constant 9.99999997E-7 : f32
    %20 = vector.broadcast %cst_6 : f32 to vector<16x1xf32>
    %21 = arith.addf %19, %20 : vector<16x1xf32>
    %22 = tpu.reciprocal %21 : vector<16x1xf32> -> vector<16x1xf32>
    %c0_7 = arith.constant 0 : index
    %c0_8 = arith.constant 0 : index
    %23 = vector.load %arg2[%c0_7, %c0_8] : memref<1x128xf32, #tpu.memory_space<vmem>>, vector<1x128xf32>
    %c0_9 = arith.constant 0 : index
    %c0_10 = arith.constant 0 : index
    %24 = vector.load %arg3[%c0_9, %c0_10] : memref<1x128xf32, #tpu.memory_space<vmem>>, vector<1x128xf32>
    %25 = vector.broadcast %22 : vector<16x1xf32> to vector<16x128xf32>
    %26 = arith.mulf %11, %25 : vector<16x128xf32>
    %27 = vector.broadcast %23 : vector<1x128xf32> to vector<16x128xf32>
    %28 = arith.mulf %26, %27 : vector<16x128xf32>
    %29 = vector.broadcast %24 : vector<1x128xf32> to vector<16x128xf32>
    %30 = arith.addf %28, %29 : vector<16x128xf32>
    %c0_11 = arith.constant 0 : index
    %c0_12 = arith.constant 0 : index
    %31 = vector.load %arg4[%c0_11, %c0_12] : memref<16x128xf32, #tpu.memory_space<vmem>>, vector<16x128xf32>
    tpu.vector_store %arg4[%c0_11, %c0_12], %30 {strides = array<i32>} : memref<16x128xf32, #tpu.memory_space<vmem>>, vector<16x128xf32>,
    return
  }
  func.func @transform_0(%arg0: i32) -> (i32, i32) {
    %c0_i32 = arith.constant 0 : i32
    %c0_i32_0 = arith.constant 0 : i32
    return %arg0, %c0_i32 : i32, i32
  }
  func.func @transform_1(%arg0: i32) -> (i32, i32) {
    %c0_i32 = arith.constant 0 : i32
    %c0_i32_0 = arith.constant 0 : i32
    %c0_i32_1 = arith.constant 0 : i32
    return %c0_i32, %c0_i32_0 : i32, i32
  }
  func.func @transform_2(%arg0: i32) -> (i32, i32) {
    %c0_i32 = arith.constant 0 : i32
    %c0_i32_0 = arith.constant 0 : i32
    %c0_i32_1 = arith.constant 0 : i32
    return %c0_i32, %c0_i32_0 : i32, i32
  }
  func.func @transform_3(%arg0: i32) -> (i32, i32) {
    %c0_i32 = arith.constant 0 : i32
    %c0_i32_0 = arith.constant 0 : i32
    return %arg0, %c0_i32 : i32, i32
  }
}

</mosaic_0001>

<bundles_post_ra>
// kernel: tpu_custom_call.1
= control target key start
LH: loop header
LB: loop body
LE: loop exit
PB: predicated region body
PF: predicated region fallthrough
CT: control target
= control target key end

     0   :  { %8 = vsyncpa [#allocation3], 0  ;;  %s215_s0 = inlined_call_operand.hbm [shape: f32[16,128], index: 0, kind: input, shape index: {}]   ;;  %s216_s1 = inlined_call_operand.vmem [shape: f32[1,128], index: 1, kind: input, shape index: {}]   ;;  %s217_s2 = inlined_call_operand.vmem [shape: f32[1,128], index: 2, kind: input, shape index: {}]   ;;  %s218_s3 = inlined_call_operand.hbm [shape: f32[16,128], index: 3, kind: output, shape index: {}]  }
   0x1   :  { %9 = vsyncpa [#allocation4], 0  ;;  %s169_s12 = smov [#allocation2]  }
   0x2   :  { %s15_s13 = sshll.u32 %s169_s12, 4  ;;  %s16_s13 = int_to_ptr.vmem [resolvable:$true] %s15_s13 }
   0x3   :  { %s133_s14 = scalar_lea.vmem %s16_s13, 256  ;;  %p138_p1 = scmp.lt.s32.totalorder %s16_s13, %s16_s13 }
   0x4   :  { %p134_p0 = scmp.ne.s32.totalorder %s16_s13, %s133_s14  ;;  %p139_p2 = scmp.lt.s32.totalorder %s133_s14, %s133_s14 }
   0x6   :  { %p140_p3 = por %p139_p2, %p138_p1 }
   0x8   :  { %p141_p4 = pnand %p140_p3, %p134_p0 }
   0xa   :  { %144 = shalt.err (!%p141_p4)
}
   0xb   :  { %s170_s15 = smov 128   ;;  %s171_s16 = smov 8  }
   0xc   :  { %21 = dma.hbm_to_vmem [thread:$0]  %s215_s0, 256, %s16_s13, [#allocation3], %s170_s15, %s170_s15, %s171_s16  }
   0xd   :  { %165 = dma.done.wait [#allocation3], 256  }
   0xe   :  { %166 = vsyncadd [#allocation3], 4294967040  ;;  %v31_v0 = vlaneseq  ;;  %v29_v2 = vld [vmem:[#allocation2] sm:$0xff]  ;;  %v30_v3 = vld [vmem:[#allocation2 + $0x8] sm:$0xff]  ;;  %s172_s22 = smov [#allocation5]  }
   0xf   :  { %v111_v33 = vld [vmem:[%s216_s1] ss:$0 sm:$0xff]  ;;  %s99_s23 = sshll.u32 %s172_s22, 4  ;;  %s100_s23 = int_to_ptr.vmem [resolvable:$true] %s99_s23 }
  0x10   :  { %v32_v1 = vand.u32 127, %v31_v0  ;;  %v112_v35 = vld [vmem:[%s217_s2] ss:$0 sm:$0xff]  ;;  %s145_s24 = scalar_lea.vmem %s100_s23, 256  ;;  %p150_p6 = scmp.lt.s32.totalorder %s100_s23, %s100_s23 }
  0x11   :  { %p146_p5 = scmp.ne.s32.totalorder %s100_s23, %s145_s24  ;;  %p151_p7 = scmp.lt.s32.totalorder %s145_s24, %s145_s24 }
  0x12   :  { %vm33_vm0 = vcmp.lt.s32.totalorder %v32_v1, 32 }
  0x13   :  { %v34_v4 = vsel %vm33_vm0, %v29_v2, 0.0  ;;  %v35_v5 = vsel %vm33_vm0, %v30_v3, 0.0  ;;  %p152_p8 = por %p151_p7, %p150_p6 }
  0x14   :  { %36 = vadd.xlane.f32.xlu0 %v34_v4 }
  0x15   :  { %p153_p9 = pnand %p152_p8, %p146_p5 }
  0x18   :  { %38 = vadd.xlane.f32.xlu0 %v35_v5 }
  0x9d   :  { %v37_v6 = vpop.xlane.xlu0 %36 }
  0x9e   :  { %v40_v7 = vmul.f32 0.03125, %v37_v6 }
  0xa0   :  { %v42_v8 = vsub.f32 %v34_v4, %v40_v7 }
  0xa1   :  { %v39_v9 = vpop.xlane.xlu0 %38 }
  0xa2   :  { %v41_v10 = vmul.f32 0.03125, %v39_v9  ;;  %v44_v11 = vsel %vm33_vm0, %v42_v8, 0.0 }
  0xa3   :  { %v46_v12 = vmul.f32 %v44_v11, %v44_v11 }
  0xa4   :  { %v43_v13 = vsub.f32 %v35_v5, %v41_v10 }
  0xa5   :  { %48 = vadd.xlane.f32.xlu1 %v46_v12 }
  0xa6   :  { %v45_v14 = vsel %vm33_vm0, %v43_v13, 0.0 }
  0xa7   :  { %v47_v15 = vmul.f32 %v45_v14, %v45_v14 }
  0xa9   :  { %50 = vadd.xlane.f32.xlu1 %v47_v15 }
 0x12e   :  { %v49_v16 = vpop.xlane.xlu1 %48 }
 0x12f   :  { %v52_v17 = vmul.f32 0.032258064, %v49_v16 }
 0x131   :  { %117 = vrsqrt.f32 %v52_v17  ;;  %vm56_vm1 = vcmp.eq.f32.partialorder %v52_v17, inf  ;;  %v59_v22 = vand.u32 2147483648, %v52_v17  ;;  %vm58_vm2 = vcmp.eq.f32.partialorder %v52_v17, 0.0 }
 0x132   :  { %v51_v18 = vpop.xlane.xlu1 %50 }
 0x133   :  { %v53_v19 = vmul.f32 0.032258064, %v51_v18 }
 0x135   :  { %119 = vrsqrt.f32 %v53_v19  ;;  %vm63_vm3 = vcmp.eq.f32.partialorder %v53_v19, inf  ;;  %v66_v28 = vand.u32 2147483648, %v53_v19  ;;  %vm65_vm4 = vcmp.eq.f32.partialorder %v53_v19, 0.0 }
 0x13e   :  { %v118_v20 = vpop.eup %117 }
 0x13f   :  { %v55_v21 = vmul.f32 %v118_v20, %v52_v17 }
 0x141   :  { %v57_v23 = vsel %vm56_vm1, %v52_v17, %v55_v21 }
 0x142   :  { %v120_v24 = vpop.eup %119  ;;  %v60_v25 = vsel %vm58_vm2, %v59_v22, %v57_v23 }
 0x143   :  { %v68_v26 = vadd.f32 1e-06, %v60_v25  ;;  %v62_v27 = vmul.f32 %v120_v24, %v53_v19 }
 0x145   :  { %121 = vrcp.f32 %v68_v26  ;;  %v64_v29 = vsel %vm63_vm3, %v53_v19, %v62_v27 }
 0x146   :  { %v67_v30 = vsel %vm65_vm4, %v66_v28, %v64_v29 }
 0x147   :  { %v69_v31 = vadd.f32 1e-06, %v67_v30 }
 0x149   :  { %123 = vrcp.f32 %v69_v31 }
 0x152   :  { %v122_v32 = vpop.eup %121 }
 0x153   :  { %v74_v34 = vmul.f32 %v122_v32, %v42_v8 }
 0x155   :  { %v82_v36 = vmul.f32 %v111_v33, %v74_v34 }
 0x156   :  { %v124_v37 = vpop.eup %123 }
 0x157   :  { %v75_v38 = vmul.f32 %v124_v37, %v43_v13  ;;  %v90_v39 = vadd.f32 %v112_v35, %v82_v36 }
 0x159   :  { %v83_v40 = vmul.f32 %v111_v33, %v75_v38  ;;  %92 = vst [vmem:[#allocation5] sm:$0xff] %v90_v39 }
 0x15b   :  { %v91_v41 = vadd.f32 %v112_v35, %v83_v40 }
 0x15d   :  { %93 = vst [vmem:[#allocation5 + $0x8] sm:$0xff] %v91_v41 }
 0x15e   :  { %156 = shalt.err (!%p153_p9)
}
 0x15f   :  { %105 = dma.vmem_to_hbm [thread:$0]  %s100_s23, 256, %s218_s3, [#allocation4], %s170_s15, %s170_s15, %s171_s16  }
 0x160   :  { %167 = dma.done.wait [#allocation4], 256  }
 0x161   :  { %168 = vsyncadd [#allocation4], 4294967040 }
 0x162   :  { %109 = vsyncpa [#allocation3], 1 }
 0x163   :  { %110 = vsyncpa [#allocation4], 1 }

</bundles_post_ra>
